<compile_context>
chip_gen: v5e
topology: v5e:2x2
jax: 0.10.0
libtpu: 0.0.40
codegen_flags: <defaults>
</compile_context>

<pallas_src>
import jax
import jax.numpy as jnp
from jax.experimental import pallas as pl
from jax.experimental.pallas import tpu as pltpu


def sce_scale_kernel(gate_ref, x_ref, out_ref):
    # gate_ref: (r, 1) f32 per-(b,c) gate; x_ref / out_ref: (r, t) activation tile.
    # Pure vld + vmul + vst -> mem-bound at HBM roofline.
    out_ref[...] = (x_ref[...] * gate_ref[...]).astype(out_ref.dtype)


def _choose_tiles(rows, cols, elem_bytes, target_bytes):
    """Pick (r, t) block dims of ~target_bytes, independent of C.

    Each dim is either the full extent (always a legal block dim) or a multiple of the
    (8, 128) vreg tiling; ragged trailing blocks are handled by Pallas store masking.
    """
    # Lane (last-dim) tile: cap so that even an 8-row block stays around target_bytes.
    t_cap = max(128, (target_bytes // (8 * elem_bytes)) // 128 * 128)
    t = cols if cols <= t_cap else t_cap
    # Sublane (row) tile: fill up to target_bytes.
    r = max(1, target_bytes // (t * elem_bytes))
    if r >= rows:
        r = rows
    else:
        r = max(8, (r // 8) * 8)
    return r, t


def _sce_gate(x, w1, w2, wf1, wf2, s_r, s_flag=True):
    """Per-(b, c) gate in f32 (tiny; fused by XLA in the wrapper, reads x exactly once)."""
    b, c, H, W = x.shape
    if s_flag:
        kh, kw = H // s_r, W // s_r
        # AdaptiveMaxPool2d(s_r) for divisible H, W: disjoint kh x kw windows.
        # TODO(synk): PyTorch AdaptiveMaxPool2d uses uneven windows when H or W % s_r != 0.
        s = x.reshape(b, c, s_r, kh, s_r, kw).max(axis=(3, 5)).reshape(b, c, s_r * s_r)
        s = s.astype(jnp.float32)
        s = jax.nn.sigmoid(
            jnp.maximum(s @ w1.T.astype(jnp.float32), 0.0) @ w2.T.astype(jnp.float32))
        y = s.mean(axis=-1)                                        # (b, c)
    else:
        y = x.astype(jnp.float32).mean(axis=(2, 3))                # (b, c)
    y = jax.nn.sigmoid(
        jnp.maximum(y @ wf1.T.astype(jnp.float32), 0.0) @ wf2.T.astype(jnp.float32))
    return y                                                        # (b, c) f32


def sce_layer(x, w1, w2, wf1, wf2, *, s_r=8, s_flag=True,
              target_block_bytes=2 << 20, alias_input=False):
    """x: (B, C, H, W) NCHW.  w1:(8,SS) w2:(SS,8) wf1:(CR,C) wf2:(C,CR) — PyTorch Linear weights."""
    b, c, H, W = x.shape
    if s_flag:
        assert H % s_r == 0 and W % s_r == 0, \
            "adaptive max pool implemented for divisible sizes only"
    hw, bc = H * W, b * c

    gate = _sce_gate(x, w1, w2, wf1, wf2, s_r, s_flag).reshape(bc, 1)   # (B*C, 1) f32, tiny
    xf = x.reshape(bc, hw)                                              # contiguous reshape: no copy

    r, t = _choose_tiles(bc, hw, jnp.dtype(x.dtype).itemsize, target_block_bytes)
    grid = (pl.cdiv(bc, r), pl.cdiv(hw, t))

    out = pl.pallas_call(
        sce_scale_kernel,
        out_shape=jax.ShapeDtypeStruct((bc, hw), x.dtype),
        grid_spec=pltpu.PrefetchScalarGridSpec(
            num_scalar_prefetch=0,
            grid=grid,
            in_specs=[
                # Per-row gate: tiny, re-fetched per row-tile (few bytes, hidden under x DMA).
                pl.BlockSpec((r, 1), lambda i, j: (i, 0)),
                # x tile.  If DMA is still exposed after block-size tuning, sweep
                # pipeline_mode=pl.Buffered(3) here.
                pl.BlockSpec((r, t), lambda i, j: (i, j)),
            ],
            out_specs=pl.BlockSpec((r, t), lambda i, j: (i, j)),
        ),
        compiler_params=pltpu.CompilerParams(
            dimension_semantics=("parallel", "parallel")),
        # Footprint-only win (not traffic); enable under jit with a donated x.
        input_output_aliases=({1: 0} if alias_input else {}),
    )(gate, xf)

    return out.reshape(b, c, H, W)


def sce_ref(x, w1, w2, wf1, wf2, s_r):
    """Pure-JAX reference matching the PyTorch module (s_flag=True)."""
    b, c, H, W = x.shape
    kh, kw = H // s_r, W // s_r
    s = x.reshape(b, c, s_r, kh, s_r, kw).max(axis=(3, 5)).reshape(b, c, s_r * s_r)
    s = jax.nn.sigmoid(jnp.maximum(s @ w1.T, 0.0) @ w2.T)
    y = s.mean(-1)
    y = jax.nn.sigmoid(jnp.maximum(y @ wf1.T, 0.0) @ wf2.T)
    return x * y[:, :, None, None]


if __name__ == "__main__":
    key = jax.random.PRNGKey(0)

    def make_case(k, b, c, H, W, s_r, c_reduction):
        kx, k1, k2, k3, k4 = jax.random.split(k, 5)
        cr = c // c_reduction
        ss = s_r * s_r
        x = jax.random.normal(kx, (b, c, H, W), jnp.float32)
        # PyTorch nn.Linear weight layout (out, in), no bias.
        w1 = 0.1 * jax.random.normal(k1, (8, ss), jnp.float32)    # spatial Linear(ss -> 8)
        w2 = 0.1 * jax.random.normal(k2, (ss, 8), jnp.float32)    # spatial Linear(8 -> ss)
        wf1 = 0.1 * jax.random.normal(k3, (cr, c), jnp.float32)   # channel Linear(c -> c/cr)
        wf2 = 0.1 * jax.random.normal(k4, (c, cr), jnp.float32)   # channel Linear(c/cr -> c)
        return x, w1, w2, wf1, wf2

    k_a, k_b = jax.random.split(key)

    # Case 1: SCELayer(channel=8, s_r=8, c_reduction=4) at small shape -> single full block.
    x, w1, w2, wf1, wf2 = make_case(k_a, 2, 8, 16, 16, 8, 4)
    out = sce_layer(x, w1, w2, wf1, wf2, s_r=8)
    jax.block_until_ready(out)
    ref = sce_ref(x, w1, w2, wf1, wf2, 8)
    assert out.shape == x.shape and out.dtype == x.dtype
    assert jnp.allclose(out, ref, atol=1e-5, rtol=1e-5), float(jnp.max(jnp.abs(out - ref)))

    # Case 2: tiny target block to force a multi-tile grid with ragged trailing blocks in BOTH
    # dims (B*C=12 rows with r=8; HW=576 lanes with t=128), exercising Pallas store masking
    # (the review's correctness concern about the no-pad path).
    x, w1, w2, wf1, wf2 = make_case(k_b, 3, 4, 24, 24, 8, 4)
    out = sce_layer(x, w1, w2, wf1, wf2, s_r=8, target_block_bytes=4096)
    jax.block_until_ready(out)
    ref = sce_ref(x, w1, w2, wf1, wf2, 8)
    assert jnp.allclose(out, ref, atol=1e-5, rtol=1e-5), float(jnp.max(jnp.abs(out - ref)))

    print("KERNEL_OK")
</pallas_src>

<mosaic_0001>
module attributes {stable_mosaic.version = 11 : i64} {
  func.func @sce_scale_kernel(%arg0: i32, %arg1: i32, %arg2: memref<16x1xf32, #tpu.memory_space<vmem>>, %arg3: memref<16x256xf32, #tpu.memory_space<vmem>>, %arg4: memref<16x256xf32, #tpu.memory_space<vmem>>) attributes {dimension_semantics = [#tpu.dimension_semantics<parallel>, #tpu.dimension_semantics<parallel>], iteration_bounds = array<i64: 1, 1>, scalar_prefetch = 0 : i64, scratch_operands = 0 : i64, tpu.core_type = #tpu.core_type<tc>, window_params = [{transform_indices = @transform_0, window_bounds = array<i64: 16, 1>}, {transform_indices = @transform_1, window_bounds = array<i64: 16, 256>}, {transform_indices = @transform_2, window_bounds = array<i64: 16, 256>}]} {
    %c0 = arith.constant 0 : index
    %c0_0 = arith.constant 0 : index
    %0 = vector.load %arg3[%c0, %c0_0] : memref<16x256xf32, #tpu.memory_space<vmem>>, vector<16x256xf32>
    %c0_1 = arith.constant 0 : index
    %c0_2 = arith.constant 0 : index
    %1 = vector.load %arg2[%c0_1, %c0_2] : memref<16x1xf32, #tpu.memory_space<vmem>>, vector<16x1xf32>
    %2 = vector.broadcast %1 : vector<16x1xf32> to vector<16x256xf32>
    %3 = arith.mulf %0, %2 : vector<16x256xf32>
    %c0_3 = arith.constant 0 : index
    %c0_4 = arith.constant 0 : index
    %4 = vector.load %arg4[%c0_3, %c0_4] : memref<16x256xf32, #tpu.memory_space<vmem>>, vector<16x256xf32>
    tpu.vector_store %arg4[%c0_3, %c0_4], %3 {strides = array<i32>} : memref<16x256xf32, #tpu.memory_space<vmem>>, vector<16x256xf32>,
    return
  }
  func.func @transform_0(%arg0: i32, %arg1: i32) -> (i32, i32) {
    %c0_i32 = arith.constant 0 : i32
    %c0_i32_0 = arith.constant 0 : i32
    return %arg0, %c0_i32 : i32, i32
  }
  func.func @transform_1(%arg0: i32, %arg1: i32) -> (i32, i32) {
    %c0_i32 = arith.constant 0 : i32
    return %arg0, %arg1 : i32, i32
  }
  func.func @transform_2(%arg0: i32, %arg1: i32) -> (i32, i32) {
    %c0_i32 = arith.constant 0 : i32
    return %arg0, %arg1 : i32, i32
  }
}

</mosaic_0001>

<bundles_post_ra>
// kernel: tpu_custom_call.1
= control target key start
LH: loop header
LB: loop body
LE: loop exit
PB: predicated region body
PF: predicated region fallthrough
CT: control target
= control target key end

     0   :  { %7 = vsyncpa [#allocation3], 0  ;;  %s167_s0 = inlined_call_operand.vmem [shape: f32[16,1], index: 0, kind: input, shape index: {}]   ;;  %s168_s1 = inlined_call_operand.hbm [shape: f32[16,256], index: 1, kind: input, shape index: {}]   ;;  %s169_s2 = inlined_call_operand.hbm [shape: f32[16,256], index: 2, kind: output, shape index: {}]  }
   0x1   :  { %8 = vsyncpa [#allocation4], 0  ;;  %s15_s11 = sshll.u32 %s168_s1, 4  ;;  %s129_s12 = smov [#allocation2]   ;;  %s16_s11 = int_to_ptr.hbm [resolvable:$true] %s15_s11 }
   0x2   :  { %s17_s13 = sshll.u32 %s129_s12, 4  ;;  %s130_s14 = smov 256   ;;  %s18_s13 = int_to_ptr.vmem [resolvable:$true] %s17_s13 }
   0x3   :  { %s131_s15 = smov 16  }
   0x4   :  { %23 = dma.hbm_to_vmem [thread:$0]  %s16_s11, 512, %s18_s13, [#allocation3], %s130_s14, %s130_s14, %s131_s15  }
   0x5   :  { %125 = dma.done.wait [#allocation3], 512  }
   0x6   :  { %126 = vsyncadd [#allocation3], 4294966784  ;;  %v132_v0 = vmov 0   ;;  %v32_v1 = vld [vmem:[%s167_s0] sm:$0xff]  ;;  %v33_v2 = vld [vmem:[%s167_s0 + $0x8] sm:$0xff]  ;;  %s133_s19 = smov [#allocation5]  }
   0x7   :  { %76 = vset.pattern.permute.xlu0 %v132_v0  ;;  %v28_v3 = vld [vmem:[#allocation2] sm:$0xff]  ;;  %v29_v4 = vld [vmem:[#allocation2 + $0x8] sm:$0xff]  ;;  %v30_v8 = vld [vmem:[#allocation2 + $0x10] sm:$0xff]  ;;  %s56_s20 = sshll.u32 %s133_s19, 4  ;;  %s58_s23 = sshll.u32 %s169_s2, 4  ;;  %s57_s20 = int_to_ptr.vmem [resolvable:$true] %s56_s20  ;;  %s59_s23 = int_to_ptr.hbm [resolvable:$true] %s58_s23 }
   0x8   :  { %36 = vperm.xlu0 %76, %v32_v1   ;;  %v31_v9 = vld [vmem:[#allocation2 + $0x18] sm:$0xff] }
  0x10   :  { %41 = vperm.xlu0 %76, %v33_v2  }
  0x7a   :  { %v37_v5 = vpop.permute.xlu0 %36 }
  0x7b   :  { %v44_v6 = vmul.f32 %v37_v5, %v28_v3  ;;  %v45_v7 = vmul.f32 %v37_v5, %v29_v4 }
  0x7d   :  { %48 = vst [vmem:[#allocation5] sm:$0xff] %v44_v6 }
  0x7e   :  { %49 = vst [vmem:[#allocation5 + $0x8] sm:$0xff] %v45_v7 }
  0x82   :  { %v42_v10 = vpop.permute.xlu0 %41 }
  0x83   :  { %v46_v11 = vmul.f32 %v42_v10, %v30_v8  ;;  %v47_v12 = vmul.f32 %v42_v10, %v31_v9 }
  0x85   :  { %50 = vst [vmem:[#allocation5 + $0x10] sm:$0xff] %v46_v11 }
  0x86   :  { %51 = vst [vmem:[#allocation5 + $0x18] sm:$0xff] %v47_v12 }
  0x87   :  { %64 = dma.vmem_to_hbm [thread:$0]  %s57_s20, 512, %s59_s23, [#allocation4], %s130_s14, %s130_s14, %s131_s15  }
  0x88   :  { %127 = dma.done.wait [#allocation4], 512  }
  0x89   :  { %128 = vsyncadd [#allocation4], 4294966784 }
  0x8a   :  { %69 = vsyncpa [#allocation3], 1 }
  0x8b   :  { %70 = vsyncpa [#allocation4], 1 }

</bundles_post_ra>
